<compile_context>
chip_gen: v7x
topology: tpu7x:2x2x1
jax: 0.10.0
libtpu: 0.0.40
codegen_flags: <defaults>
</compile_context>

<pallas_src>
import functools

import jax
import jax.numpy as jnp
from jax.experimental import pallas as pl
from jax.experimental.pallas import tpu as pltpu


def _prep_kernel(e_ref, et_ref, wpt_ref, bpt_ref, st_ref, wt_ref, bt_ref, *, cheb_k):
    """Node-level precompute (batch independent).

    e_ref   : [N, D]              node embeddings
    et_ref  : [D, N]              node embeddings transposed (N lane-dense)
    wpt_ref : [K*Ci*Co, D]        weights_pool flattened + transposed
    bpt_ref : [Co, D]             bias_pool transposed
    st_ref  : [K-1, N, N]  out    T_k^T for k=1..K-1 (identity support dropped), bf16
    wt_ref  : [K*Ci*Co, N] out    per-node weights, node axis on lanes, f32
    bt_ref  : [Co, N]      out    per-node bias, node axis on lanes, f32
    """
    E = e_ref[...].astype(jnp.float32)        # [N, D]
    Et = et_ref[...].astype(jnp.float32)      # [D, N]
    N = E.shape[0]

    # relu(E @ E^T) is symmetric, so the row-softmax of the PyTorch module equals
    # a column softmax computed directly in the transposed (N-on-lanes) layout.
    logits = jnp.maximum(jnp.dot(E, Et, preferred_element_type=jnp.float32), 0.0)
    m = jnp.max(logits, axis=0, keepdims=True)             # [1, N]
    ex = jnp.exp(logits - m)
    denom = jnp.sum(ex, axis=0, keepdims=True)             # [1, N]
    inv = pl.reciprocal(denom, approx=True)                # EUP slot (near free)
    inv = inv * (2.0 - denom * inv)                        # one Newton step -> f32 accuracy
    St = ex * inv                                          # supports^T, [N, N], f32

    st_ref[0] = St.astype(st_ref.dtype)                    # T_1^T (bf16 MXU operand)
    if cheb_k > 2:
        eye = jnp.eye(N, dtype=jnp.float32)                # recursion only; never stored
        two_St = 2.0 * St                                  # hoisted out of the recursion
        prev, cur = eye, St
        for k in range(2, cheb_k):
            nxt = jnp.dot(cur, two_St, preferred_element_type=jnp.float32) - prev
            st_ref[k - 1] = nxt.astype(st_ref.dtype)
            prev, cur = cur, nxt

    # Per-node weights/bias generated directly in the layout the conv kernel
    # consumes (lane-dense on N).  Note: contraction depth is only D, so this is
    # far below MXU peak — acceptable as a one-shot prep cost amortized over B.
    wt_ref[...] = jnp.dot(wpt_ref[...].astype(jnp.float32), Et,
                          preferred_element_type=jnp.float32)   # [K*Ci*Co, N]
    bt_ref[...] = jnp.dot(bpt_ref[...].astype(jnp.float32), Et,
                          preferred_element_type=jnp.float32)   # [Co, N]


def _gconv_kernel(st_ref, wt_ref, bt_ref, x_ref, o_ref, *, cheb_k, tb):
    """Batched graph convolution (grid over batch tiles; N on the lane axis).

    st_ref : [K-1, N, N]      T_k^T, k=1..K-1 (bf16)
    wt_ref : [K, Ci, Co, N]   per-node weights (f32)
    bt_ref : [Co, N]          per-node bias (f32)
    x_ref  : [TB, N, Ci]      this tile's features in the module's native layout
    o_ref  : [TB, N, Co]      output in the module's native layout
    """
    f32 = jnp.float32
    x_blk = x_ref[...].astype(f32)                          # [TB, N, Ci]
    n, ci = x_blk.shape[1], x_blk.shape[2]
    co = bt_ref.shape[0]

    # In-kernel relayout (XLU, overlapped with MXU work) instead of a separate
    # full-HBM transpose pass in the wrapper: stack per-batch x^T on sublanes.
    xT_list = [jnp.transpose(x_blk[t]) for t in range(tb)]  # each [Ci, N]
    xT = jnp.concatenate(xT_list, axis=0) if tb > 1 else xT_list[0]   # [TB*Ci, N]
    xT3 = xT.reshape(tb, ci, n)                             # free leading-dim split

    # k = 0 (identity support): no matmul — seed the accumulator with
    # bias + sum_i x^T[t, i, :] * W_0[i, :, :].  FMA-style, no [Ci,Co,N] temp.
    acc = jnp.broadcast_to(bt_ref[...].astype(f32)[None], (tb, co, n))
    w0 = wt_ref[0].astype(f32)                              # [Ci, Co, N]
    for i in range(ci):
        acc = acc + xT3[:, i:i + 1, :] * w0[i][None]        # [TB,1,N]*[1,Co,N]

    # k >= 1: one lane-dense [TB*Ci, N] @ [N, N] matmul per Chebyshev order,
    # bf16 MXU operands, f32 accumulation.
    xT_mxu = xT.astype(st_ref.dtype)
    for k in range(1, cheb_k):
        xg = jnp.dot(xT_mxu, st_ref[k - 1],
                     preferred_element_type=f32).reshape(tb, ci, n)   # [TB, Ci, N]
        w_k = wt_ref[k].astype(f32)                         # [Ci, Co, N]
        for i in range(ci):                                 # FMA-style combine
            acc = acc + xg[:, i:i + 1, :] * w_k[i][None]

    # Store in the module's [N, Co] layout (small per-batch XLU transpose; avoids
    # a separate wrapper transpose pass over the whole output tensor).
    for t in range(tb):
        o_ref[t] = jnp.transpose(acc[t]).astype(o_ref.dtype)


def _pick_tb(batch, ci, target_rows=256):
    """Largest divisor of `batch` with tb*ci <= target MXU row count.
    (target_rows≈128 is enough on v5e's 4x128 MXU; 256 for v6e/v7x.)"""
    tb = max(1, min(batch, max(1, target_rows // max(ci, 1))))
    while batch % tb:
        tb -= 1
    return tb


def avwgcn_forward(x, node_embeddings, weights_pool, bias_pool, *,
                   cheb_k, model_name="plain", p1=0.1,
                   support_dtype=jnp.bfloat16, target_mxu_rows=256):
    B, N, Ci = x.shape
    D, K, Ci2, Co = weights_pool.shape
    assert K == cheb_k and cheb_k >= 2 and Ci2 == Ci
    assert node_embeddings.shape == (N, D) and bias_pool.shape == (D, Co)

    f32 = jnp.float32
    E = node_embeddings.astype(f32)                         # [N, D]
    Et = jnp.transpose(E)                                   # [D, N]
    # [D, K, Ci, Co] -> [K*Ci*Co, D], row r = (k*Ci + i)*Co + o.
    wpt = jnp.transpose(weights_pool.astype(f32).reshape(D, K * Ci * Co))
    bpt = jnp.transpose(bias_pool.astype(f32))              # [Co, D]

    # ---- prep: softmax adjacency, Chebyshev stack, per-node weights/bias ----
    prep_flops = (2 * N * N * D + max(0, cheb_k - 2) * 2 * N * N * N
                  + 2 * K * Ci * Co * D * N + 2 * Co * D * N)
    prep_bytes = (4 * (2 * N * D + K * Ci * Co * D + Co * D
                       + K * Ci * Co * N + Co * N)
                  + 2 * (K - 1) * N * N)
    st, wt, bt = pl.pallas_call(
        functools.partial(_prep_kernel, cheb_k=cheb_k),
        out_shape=(jax.ShapeDtypeStruct((K - 1, N, N), support_dtype),
                   jax.ShapeDtypeStruct((K * Ci * Co, N), f32),
                   jax.ShapeDtypeStruct((Co, N), f32)),
        in_specs=[pl.BlockSpec(memory_space=pltpu.MemorySpace.VMEM)] * 4,
        out_specs=(pl.BlockSpec(memory_space=pltpu.MemorySpace.VMEM),) * 3,
        cost_estimate=pl.CostEstimate(flops=prep_flops, transcendentals=N * N,
                                      bytes_accessed=prep_bytes),
    )(E, Et, wpt, bpt)

    wt4 = wt.reshape(K, Ci, Co, N)                          # free leading-dim split

    # ---- batched graph convolution ----
    TB = _pick_tb(B, Ci, target_mxu_rows)
    grid = (B // TB,)

    itemsize = jnp.dtype(x.dtype).itemsize
    blk_bytes = (st.size * jnp.dtype(support_dtype).itemsize
                 + wt.size * 4 + bt.size * 4
                 + TB * N * Ci * itemsize + TB * N * Co * itemsize)
    # Double-buffered resident footprint + headroom; raise past v5e's 16 MiB
    # scoped default, never above v7x's 64 MiB physical.
    vmem_limit = int(min(max(2 * blk_bytes + (8 << 20), 32 << 20), 64 << 20))

    conv_flops = B * (2 * (K - 1) * Ci * N * N + 2 * K * Ci * Co * N)
    conv_bytes = ((B // TB) * (2 * (K - 1) * N * N + 4 * K * Ci * Co * N + 4 * Co * N)
                  + itemsize * B * N * (Ci + Co))

    # NOTE: for very large K*Ci*Co*N (e.g. Ci=Co=64, N>=512) add a second
    # "parallel" grid axis tiling the lane dim N, and/or single-buffer the
    # grid-invariant st/wt4/bt blocks — not needed at these sizes.
    out = pl.pallas_call(
        functools.partial(_gconv_kernel, cheb_k=cheb_k, tb=TB),
        grid=grid,
        out_shape=jax.ShapeDtypeStruct((B, N, Co), x.dtype),
        in_specs=[
            pl.BlockSpec((K - 1, N, N), lambda b: (0, 0, 0)),        # resident
            pl.BlockSpec((K, Ci, Co, N), lambda b: (0, 0, 0, 0)),    # resident
            pl.BlockSpec((Co, N), lambda b: (0, 0)),                 # resident
            pl.BlockSpec((TB, N, Ci), lambda b: (b, 0, 0)),          # streamed
        ],
        out_specs=pl.BlockSpec((TB, N, Co), lambda b: (b, 0, 0)),
        compiler_params=pltpu.CompilerParams(
            dimension_semantics=("parallel",),
            vmem_limit_bytes=vmem_limit),
        cost_estimate=pl.CostEstimate(flops=conv_flops, transcendentals=0,
                                      bytes_accessed=conv_bytes),
    )(st, wt4, bt, x)

    # TODO(synk): model_name in {'dropout','combined'} applies F.dropout (stochastic,
    # training-mode); eval-mode / identity semantics used here.
    return out


def avwgcn_reference(x, E, Wp, bp, cheb_k):
    """Plain-JAX reference matching the PyTorch forward exactly (f32)."""
    N = E.shape[0]
    supports = jax.nn.softmax(jax.nn.relu(E @ E.T), axis=1)
    ss = [jnp.eye(N, dtype=x.dtype), supports]
    for _ in range(2, cheb_k):
        ss.append(2.0 * supports @ ss[-1] - ss[-2])
    S = jnp.stack(ss, axis=0)                               # [K, N, N]
    weights = jnp.einsum("nd,dkio->nkio", E, Wp)            # [N, K, Ci, Co]
    bias = E @ bp                                           # [N, Co]
    x_g = jnp.einsum("knm,bmc->bknc", S, x).transpose(0, 2, 1, 3)
    return jnp.einsum("bnki,nkio->bno", x_g, weights) + bias


if __name__ == "__main__":
    # Small, deterministic shapes consistent with the module.
    B, N, dim_in, dim_out, cheb_k, embed_dim = 2, 16, 4, 8, 3, 8

    key = jax.random.PRNGKey(0)
    kx, ke, kw, kb = jax.random.split(key, 4)
    x = jax.random.normal(kx, (B, N, dim_in), dtype=jnp.float32)
    node_embeddings = jax.random.normal(ke, (N, embed_dim), dtype=jnp.float32)
    weights_pool = 0.1 * jax.random.normal(kw, (embed_dim, cheb_k, dim_in, dim_out),
                                           dtype=jnp.float32)
    bias_pool = 0.1 * jax.random.normal(kb, (embed_dim, dim_out), dtype=jnp.float32)

    out = avwgcn_forward(x, node_embeddings, weights_pool, bias_pool, cheb_k=cheb_k)
    out = jax.block_until_ready(out)

    ref = avwgcn_reference(x, node_embeddings, weights_pool, bias_pool, cheb_k)
    assert out.shape == (B, N, dim_out)
    # Tolerance covers bf16 MXU operands (supports + x cast), the EUP-reciprocal
    # softmax path, and MXU accumulation-order differences vs the XLA reference.
    assert jnp.allclose(out, ref, atol=2e-2, rtol=2e-2), "mismatch vs reference"

    print("KERNEL_OK")
</pallas_src>

<mosaic_0001>
module attributes {stable_mosaic.version = 11 : i64} {
  func.func @_prep_kernel(%arg0: memref<16x8xf32, #tpu.memory_space<vmem>>, %arg1: memref<8x16xf32, #tpu.memory_space<vmem>>, %arg2: memref<96x8xf32, #tpu.memory_space<vmem>>, %arg3: memref<8x8xf32, #tpu.memory_space<vmem>>, %arg4: memref<2x16x16xbf16, #tpu.memory_space<vmem>>, %arg5: memref<96x16xf32, #tpu.memory_space<vmem>>, %arg6: memref<8x16xf32, #tpu.memory_space<vmem>>) attributes {dimension_semantics = [], scalar_prefetch = 0 : i64, scratch_operands = 0 : i64, tpu.core_type = #tpu.core_type<tc>} {
    %c0 = arith.constant 0 : index
    %c0_0 = arith.constant 0 : index
    %0 = vector.load %arg0[%c0, %c0_0] : memref<16x8xf32, #tpu.memory_space<vmem>>, vector<16x8xf32>
    %c0_1 = arith.constant 0 : index
    %c0_2 = arith.constant 0 : index
    %1 = vector.load %arg1[%c0_1, %c0_2] : memref<8x16xf32, #tpu.memory_space<vmem>>, vector<8x16xf32>
    %cst = arith.constant dense<0.000000e+00> : vector<16x16xf32>
    %2 = tpu.matmul %0, %1, %cst {dimension_numbers = #tpu.dot_dimension_numbers<[1], [0], [0], [1], [0, 0, 1, 1], [], []>} : vector<16x8xf32>, vector<8x16xf32>, vector<16x16xf32> -> vector<16x16xf32>
    %cst_3 = arith.constant 0.000000e+00 : f32
    %3 = vector.broadcast %cst_3 : f32 to vector<16x16xf32>
    %4 = arith.maximumf %2, %3 : vector<16x16xf32>
    %cst_4 = arith.constant dense<0xFF800000> : vector<16xf32>
    %5 = vector.multi_reduction <maximumf>, %4, %cst_4 [0] : vector<16x16xf32> to vector<16xf32>
    %6 = vector.shape_cast %5 : vector<16xf32> to vector<1x16xf32>
    %7 = vector.broadcast %6 : vector<1x16xf32> to vector<16x16xf32>
    %8 = arith.subf %4, %7 : vector<16x16xf32>
    %9 = math.exp %8 : vector<16x16xf32>
    %cst_5 = arith.constant dense<0.000000e+00> : vector<16xf32>
    %10 = vector.multi_reduction <add>, %9, %cst_5 [0] : vector<16x16xf32> to vector<16xf32>
    %11 = vector.shape_cast %10 : vector<16xf32> to vector<1x16xf32>
    %12 = tpu.reciprocal %11 {approx = true} : vector<1x16xf32> -> vector<1x16xf32>
    %13 = arith.mulf %11, %12 : vector<1x16xf32>
    %cst_6 = arith.constant 2.000000e+00 : f32
    %14 = vector.broadcast %cst_6 : f32 to vector<1x16xf32>
    %15 = arith.subf %14, %13 : vector<1x16xf32>
    %16 = arith.mulf %12, %15 : vector<1x16xf32>
    %17 = vector.broadcast %16 : vector<1x16xf32> to vector<16x16xf32>
    %18 = arith.mulf %9, %17 : vector<16x16xf32>
    %19 = arith.truncf %18 : vector<16x16xf32> to vector<16x16xbf16>
    %c0_7 = arith.constant 0 : index
    %c0_8 = arith.constant 0 : index
    %c0_9 = arith.constant 0 : index
    %20 = vector.load %arg4[%c0_7, %c0_8, %c0_9] : memref<2x16x16xbf16, #tpu.memory_space<vmem>>, vector<1x16x16xbf16>
    %21 = vector.shape_cast %20 : vector<1x16x16xbf16> to vector<16x16xbf16>
    %22 = vector.shape_cast %19 : vector<16x16xbf16> to vector<1x16x16xbf16>
    tpu.vector_store %arg4[%c0_7, %c0_8, %c0_9], %22 {strides = array<i32>} : memref<2x16x16xbf16, #tpu.memory_space<vmem>>, vector<1x16x16xbf16>,
    %23 = tpu.iota {dimensions = array<i32: 0>} : vector<16x16xi32>
    %24 = tpu.iota {dimensions = array<i32: 1>} : vector<16x16xi32>
    %c0_i32 = arith.constant 0 : i32
    %25 = vector.broadcast %c0_i32 : i32 to vector<16x16xi32>
    %26 = arith.addi %23, %25 : vector<16x16xi32>
    %27 = arith.cmpi eq, %26, %24 : vector<16x16xi32>
    %28 = arith.extui %27 : vector<16x16xi1> to vector<16x16xi32>
    %29 = arith.sitofp %28 : vector<16x16xi32> to vector<16x16xf32>
    %cst_10 = arith.constant 2.000000e+00 : f32
    %30 = vector.broadcast %cst_10 : f32 to vector<16x16xf32>
    %31 = arith.mulf %30, %18 : vector<16x16xf32>
    %cst_11 = arith.constant dense<0.000000e+00> : vector<16x16xf32>
    %32 = tpu.matmul %18, %31, %cst_11 {dimension_numbers = #tpu.dot_dimension_numbers<[1], [0], [0], [1], [0, 0, 1, 1], [], []>} : vector<16x16xf32>, vector<16x16xf32>, vector<16x16xf32> -> vector<16x16xf32>
    %33 = arith.subf %32, %29 : vector<16x16xf32>
    %34 = arith.truncf %33 : vector<16x16xf32> to vector<16x16xbf16>
    %c1 = arith.constant 1 : index
    %c0_12 = arith.constant 0 : index
    %c0_13 = arith.constant 0 : index
    %35 = vector.load %arg4[%c1, %c0_12, %c0_13] : memref<2x16x16xbf16, #tpu.memory_space<vmem>>, vector<1x16x16xbf16>
    %36 = vector.shape_cast %35 : vector<1x16x16xbf16> to vector<16x16xbf16>
    %37 = vector.shape_cast %34 : vector<16x16xbf16> to vector<1x16x16xbf16>
    tpu.vector_store %arg4[%c1, %c0_12, %c0_13], %37 {strides = array<i32>} : memref<2x16x16xbf16, #tpu.memory_space<vmem>>, vector<1x16x16xbf16>,
    %c0_14 = arith.constant 0 : index
    %c0_15 = arith.constant 0 : index
    %38 = vector.load %arg2[%c0_14, %c0_15] : memref<96x8xf32, #tpu.memory_space<vmem>>, vector<96x8xf32>
    %cst_16 = arith.constant dense<0.000000e+00> : vector<96x16xf32>
    %39 = tpu.matmul %38, %1, %cst_16 {dimension_numbers = #tpu.dot_dimension_numbers<[1], [0], [0], [1], [0, 0, 1, 1], [], []>} : vector<96x8xf32>, vector<8x16xf32>, vector<96x16xf32> -> vector<96x16xf32>
    %c0_17 = arith.constant 0 : index
    %c0_18 = arith.constant 0 : index
    %40 = vector.load %arg5[%c0_17, %c0_18] : memref<96x16xf32, #tpu.memory_space<vmem>>, vector<96x16xf32>
    tpu.vector_store %arg5[%c0_17, %c0_18], %39 {strides = array<i32>} : memref<96x16xf32, #tpu.memory_space<vmem>>, vector<96x16xf32>,
    %c0_19 = arith.constant 0 : index
    %c0_20 = arith.constant 0 : index
    %41 = vector.load %arg3[%c0_19, %c0_20] : memref<8x8xf32, #tpu.memory_space<vmem>>, vector<8x8xf32>
    %cst_21 = arith.constant dense<0.000000e+00> : vector<8x16xf32>
    %42 = tpu.matmul %41, %1, %cst_21 {dimension_numbers = #tpu.dot_dimension_numbers<[1], [0], [0], [1], [0, 0, 1, 1], [], []>} : vector<8x8xf32>, vector<8x16xf32>, vector<8x16xf32> -> vector<8x16xf32>
    %c0_22 = arith.constant 0 : index
    %c0_23 = arith.constant 0 : index
    %43 = vector.load %arg6[%c0_22, %c0_23] : memref<8x16xf32, #tpu.memory_space<vmem>>, vector<8x16xf32>
    tpu.vector_store %arg6[%c0_22, %c0_23], %42 {strides = array<i32>} : memref<8x16xf32, #tpu.memory_space<vmem>>, vector<8x16xf32>,
    return
  }
}

</mosaic_0001>

<bundles_post_ra>
// kernel: tpu_custom_call.1
= control target key start
LH: loop header
LB: loop body
LE: loop exit
PB: predicated region body
PF: predicated region fallthrough
CT: control target
= control target key end

     0   :  { %12 = vsyncpa [#allocation3], 0  ;;  %vm25_vm0 = vcmask 64512   ;;  %s900_s0 = inlined_call_operand.vmem [shape: f32[16,8], index: 0, kind: input, shape index: {}]   ;;  %s901_s1 = inlined_call_operand.vmem [shape: f32[8,16], index: 1, kind: input, shape index: {}]   ;;  %s902_s2 = inlined_call_operand.vmem [shape: f32[96,8], index: 2, kind: input, shape index: {}]   ;;  %s903_s3 = inlined_call_operand.vmem [shape: f32[8,8], index: 3, kind: input, shape index: {}]   ;;  %s904_s4 = inlined_call_operand.hbm [shape: bf16[2,16,16], index: 4, kind: output, shape index: {0}]   ;;  %s905_s5 = inlined_call_operand.vmem [shape: f32[96,16], index: 5, kind: output, shape index: {1}]   ;;  %s906_s6 = inlined_call_operand.hbm [shape: f32[8,16], index: 6, kind: output, shape index: {2}]  }
   0x1   :  { %v748_v0 = vld [vmem:[%s901_s1] sm:$0xff]  ;;  %v23_v2 = vld [vmem:[%s900_s0 + $0x8] sm:$0xff] }
   0x2   :  { %v22_v1 = vld [vmem:[%s900_s0] sm:$0xff]  ;;  %601 = vmatprep.subr.mxu0 %v748_v0 }
   0x3   :  { %603 = vmatprep.mubr.msk.f32.mxu0 %vm25_vm0, %v22_v1 }
   0x4   :  { %13 = vsyncpa [#allocation5], 0  ;;  %602 = vmatpush3.msra.mxu0 %v748_v0  ;;  %v258_v3 = vld [vmem:[%s902_s2] sm:$0xff]  ;;  %v259_v4 = vld [vmem:[%s902_s2 + $0x8] sm:$0xff]  ;;  %vm109_vm1 = vcmask 130048   ;;  %vm148_vm2 = vcmask 125952  }
   0x5   :  { %604 = vmatmul.mubr.msk.f32.vlgmr.msra.gmra.mrb[0].mxu0 %vm25_vm0, %v23_v2  ;;  %613 = vmatprep.subr.mxu0 %v748_v0  ;;  %v260_v5 = vld [vmem:[%s902_s2 + $0x10] sm:$0xff]  ;;  %v261_v6 = vld [vmem:[%s902_s2 + $0x18] sm:$0xff]  ;;  %v262_v7 = vld [vmem:[%s902_s2 + $0x20] sm:$0xff]  ;;  %v704_v52 = vmov 0.0   ;;  %vm705_vm3 = vmmov 0   ;;  %s706_s15 = smov [#allocation2]  }
   0x6   :  { %614 = vmatpush3.msra.mxu0 %v748_v0  ;;  %615 = vmatprep.mubr.msk.f32.mxu0 %vm25_vm0, %v258_v3  ;;  %v263_v8 = vld [vmem:[%s902_s2 + $0x28] sm:$0xff]  ;;  %v264_v9 = vld [vmem:[%s902_s2 + $0x30] sm:$0xff]  ;;  %v265_v10 = vld [vmem:[%s902_s2 + $0x38] sm:$0xff]  ;;  %s523_s16 = sshll.u32 %s706_s15, 4  ;;  %s524_s16 = int_to_ptr.vmem [resolvable:$true] %s523_s16 }
   0x7   :  { %v266_v50 = vld [vmem:[%s902_s2 + $0x40] sm:$0xff]  ;;  %v267_v51 = vld [vmem:[%s902_s2 + $0x48] sm:$0xff]  ;;  %v268_v53 = vld [vmem:[%s902_s2 + $0x50] sm:$0xff]  ;;  %s656_s21 = scalar_lea.vmem %s524_s16, 256  ;;  %p661_p1 = scmp.lt.s32.totalorder %s524_s16, %s524_s16 }
   0x8   :  { %v269_v54 = vld [vmem:[%s902_s2 + $0x58] sm:$0xff]  ;;  %v443_v55 = vld [vmem:[%s903_s3] sm:$0xff]  ;;  %p657_p0 = scmp.ne.s32.totalorder %s524_s16, %s656_s21  ;;  %p662_p2 = scmp.lt.s32.totalorder %s656_s21, %s656_s21 }
   0x9   :  { %616 = vmatmul.mubr.msk.f32.vlgmr.msra.gmra.mrb[2].mxu0 %vm25_vm0, %v259_v4 }
   0xa   :  { %618 = vmatprep.mubr.msk.f32.mxu0 %vm25_vm0, %v260_v5  ;;  %p663_p3 = por %p662_p2, %p661_p1 }
   0xc   :  { %p664_p4 = pnand %p663_p3, %p657_p0 }
   0xd   :  { %619 = vmatmul.mubr.msk.f32.gmra.mrb[4].mxu0 %vm25_vm0, %v261_v6 }
   0xe   :  { %621 = vmatprep.mubr.msk.f32.mxu0 %vm25_vm0, %v262_v7 }
  0x11   :  { %622 = vmatmul.mubr.msk.f32.gmra.mrb[6].mxu0 %vm25_vm0, %v263_v8 }
  0x12   :  { %624 = vmatprep.mubr.msk.f32.mxu0 %vm25_vm0, %v264_v9 }
  0x15   :  { %625 = vmatmul.mubr.msk.f32.gmra.mrb[8].mxu0 %vm25_vm0, %v265_v10 }
  0xd8   :  { %v605_v11 = vpop.f32.mrb[0].mxu0 }
  0xd9   :  { %v108_v12 = vmax.f32 %v605_v11, 0.0  ;;  %v98_v13 = vpop.f32.mrb[1].mxu0 }
  0xda   :  { %v107_v14 = vmax.f32 %v98_v13, 0.0 }
  0xdb   :  { %v111_v15 = vsel %vm109_vm1, %v108_v12, -inf }
  0xdc   :  { %v110_v16 = vsel %vm109_vm1, %v107_v14, -inf  ;;  %v617_v56 = vpop.f32.mrb[2].mxu0 }
  0xdd   :  { %v112_v17 = vmax.f32 %v110_v16, %v111_v15  ;;  %432 = vst.msk [vmem:[%s905_s5 + $0x8] sm:$0xff] %vm109_vm1, %v617_v56  ;;  %v372_v57 = vpop.f32.mrb[3].mxu0 }
  0xde   :  { %431 = vst.msk [vmem:[%s905_s5] sm:$0xff] %vm109_vm1, %v372_v57 }
  0xdf   :  { %v113_v18 = vrot.slane %v112_v17, 4 }
  0xe0   :  { %v620_v58 = vpop.f32.mrb[4].mxu0 }
  0xe1   :  { %v114_v19 = vmax.f32 %v112_v17, %v113_v18  ;;  %434 = vst.msk [vmem:[%s905_s5 + $0x18] sm:$0xff] %vm109_vm1, %v620_v58  ;;  %v382_v59 = vpop.f32.mrb[5].mxu0 }
  0xe2   :  { %433 = vst.msk [vmem:[%s905_s5 + $0x10] sm:$0xff] %vm109_vm1, %v382_v59 }
  0xe3   :  { %v115_v20 = vrot.slane %v114_v19, 2 }
  0xe4   :  { %v623_v60 = vpop.f32.mrb[6].mxu0 }
  0xe5   :  { %v116_v21 = vmax.f32 %v114_v19, %v115_v20  ;;  %436 = vst.msk [vmem:[%s905_s5 + $0x28] sm:$0xff] %vm109_vm1, %v623_v60  ;;  %v392_v61 = vpop.f32.mrb[7].mxu0 }
  0xe6   :  { %435 = vst.msk [vmem:[%s905_s5 + $0x20] sm:$0xff] %vm109_vm1, %v392_v61 }
  0xe7   :  { %v117_v22 = vrot.slane %v116_v21, 1 }
  0xe8   :  { %v626_v62 = vpop.f32.mrb[8].mxu0 }
  0xe9   :  { %v118_v23 = vmax.f32 %v116_v21, %v117_v22  ;;  %438 = vst.msk [vmem:[%s905_s5 + $0x38] sm:$0xff] %vm109_vm1, %v626_v62  ;;  %v402_v63 = vpop.f32.mrb[9].mxu0 }
  0xea   :  { %437 = vst.msk [vmem:[%s905_s5 + $0x30] sm:$0xff] %vm109_vm1, %v402_v63 }
  0xeb   :  { %v119_v24 = vsub.f32 %v107_v14, %v118_v23  ;;  %v120_v25 = vsub.f32 %v108_v12, %v118_v23 }
  0xed   :  { %v121_v26 = vmul.f32 1.442695, %v119_v24  ;;  %v123_v27 = vmul.f32 1.442695, %v120_v25 }
  0xef   :  { %650 = vpow2.f32 %v121_v26 }
  0xf0   :  { %652 = vpow2.f32 %v123_v27 }
  0xf9   :  { %v651_v28 = vpop.eup %650 }
  0xfa   :  { %v653_v29 = vpop.eup %652  ;;  %v125_v30 = vsel %vm109_vm1, %v651_v28, 0.0 }
  0xfb   :  { %v126_v31 = vsel %vm109_vm1, %v653_v29, 0.0 }
  0xfc   :  { %v127_v32 = vadd.f32 %v126_v31, %v125_v30 }
  0xfe   :  { %v128_v33 = vrot.slane %v127_v32, 4 }
 0x100   :  { %v129_v34 = vadd.f32 %v128_v33, %v127_v32 }
 0x102   :  { %v130_v35 = vrot.slane %v129_v34, 2 }
 0x104   :  { %v131_v36 = vadd.f32 %v130_v35, %v129_v34 }
 0x106   :  { %v132_v37 = vrot.slane %v131_v36, 1 }
 0x108   :  { %v133_v38 = vadd.f32 %v132_v37, %v131_v36 }
 0x10a   :  { %654 = vrcp.f32 %v133_v38 }
 0x114   :  { %v655_v39 = vpop.eup %654 }
 0x115   :  { %v135_v40 = vmul.f32 %v655_v39, %v133_v38 }
 0x117   :  { %v136_v41 = vsub.f32 2.0, %v135_v40 }
 0x119   :  { %v137_v42 = vmul.f32 %v655_v39, %v136_v41 }
 0x11b   :  { %v138_v43 = vmul.f32 %v651_v28, %v137_v42  ;;  %v139_v44 = vmul.f32 %v653_v29, %v137_v42 }
 0x11d   :  { %v575_v45 = vpack.c.bf16 %v138_v43, %v138_v43  ;;  %610 = vmatprep.mubr.msk.f32.mxu1 %vm109_vm1, %v138_v43  ;;  %v576_v46 = vpack.c.bf16 %v139_v44, %v139_v44  ;;  %v162_v47 = vmul.f32 2.0, %v138_v43  ;;  %v163_v48 = vmul.f32 2.0, %v139_v44 }
 0x11f   :  { %v638_v49 = vpack.c.bf16 %v163_v48, %v162_v47  ;;  %149 = vst.msk [vmem:[#allocation2] sm:$0xf] %vm148_vm2, %v575_v45  ;;  %150 = vst.msk [vmem:[#allocation2 + $0x4] sm:$0xf] %vm148_vm2, %v576_v46 }
 0x121   :  { %639 = vmatprep.subr.bf16.mxu1 %v638_v49 }
 0x122   :  { %641 = vmatpush3.bf16.msra.mxu1 %v638_v49 }
 0x123   :  { %642 = vmatprep.subr.mxu1 %v748_v0 }
 0x125   :  { %611 = vmatmul.mubr.msk.f32.vlgmr.msra.gmra.mrb[0].mxu1 %vm109_vm1, %v139_v44 }
 0x126   :  { %643 = vmatpush3.msra.mxu1 %v748_v0  ;;  %627 = vmatprep.mubr.msk.f32.mxu1 %vm25_vm0, %v266_v50 }
 0x127   :  { %633 = vmatprep.subr.mxu1 %v704_v52 }
 0x129   :  { %628 = vmatmul.mubr.msk.f32.vlgmr.msra.gmra.mrb[2].mxu1 %vm25_vm0, %v267_v51 }
 0x12a   :  { %634 = vmatpush3.msra.mxu1 %v748_v0  ;;  %630 = vmatprep.mubr.msk.f32.mxu1 %vm25_vm0, %v268_v53  ;;  %v151_v0 = vlaneseq }
 0x12c   :  { %v152_v1 = vshrl.u32 %v151_v0, 7  ;;  %v155_v3 = vand.u32 127, %v151_v0 }
 0x12d   :  { %631 = vmatmul.mubr.msk.f32.gmra.mrb[4].mxu1 %vm25_vm0, %v269_v54 }
 0x12e   :  { %635 = vmatprep.mubr.msk.f32.mxu1 %vm705_vm3, %v704_v52  ;;  %v153_v2 = vadd.s32 8, %v152_v1  ;;  %vm156_vm5 = vcmp.eq.s32.totalorder %v152_v1, %v155_v3 }
 0x12f   :  { %v556_v5 = vsel %vm156_vm5, 1.0, %v704_v52 }
 0x130   :  { %vm157_vm4 = vcmp.eq.s32.totalorder %v153_v2, %v155_v3 }
 0x131   :  { %636 = vmatmul.mubr.msk.f32.vlgmr.msra.gmra.mrb[6].mxu1 %vm25_vm0, %v443_v55  ;;  %v557_v4 = vsel %vm157_vm4, 1.0, %v704_v52 }
 0x1f8   :  { %v612_v6 = vpop.f32.mrb[0].mxu1 }
 0x1f9   :  { %v246_v7 = vsub.f32 %v612_v6, %v557_v4  ;;  %v236_v8 = vpop.f32.mrb[1].mxu1 }
 0x1fa   :  { %v245_v9 = vsub.f32 %v236_v8, %v556_v5 }
 0x1fb   :  { %v578_v10 = vpack.c.bf16 %v246_v7, %v246_v7 }
 0x1fc   :  { %v577_v11 = vpack.c.bf16 %v245_v9, %v245_v9  ;;  %v629_v12 = vpop.f32.mrb[2].mxu1 }
 0x1fd   :  { %257 = vst.msk [vmem:[#allocation2 + $0xc] sm:$0xf] %vm148_vm2, %v578_v10  ;;  %v412_v13 = vpop.f32.mrb[3].mxu1 }
 0x1fe   :  { %440 = vst.msk [vmem:[%s905_s5 + $0x48] sm:$0xff] %vm109_vm1, %v629_v12  ;;  %439 = vst.msk [vmem:[%s905_s5 + $0x40] sm:$0xff] %vm109_vm1, %v412_v13 }
 0x1ff   :  { %256 = vst.msk [vmem:[#allocation2 + $0x8] sm:$0xf] %vm148_vm2, %v577_v11 }
 0x200   :  { %667 = shalt.err (!%p664_p4)
}
 0x201   :  { %s668_s24 = scalar_lea.hbm %s904_s4, 256 }
 0x202   :  { %p669_p5 = scmp.ne.s32.totalorder %s904_s4, %s668_s24  ;;  %p672_p6 = scmp.lt.u32.totalorder %s668_s24, %s904_s4 }
 0x204   :  { %p674_p7 = pnand %p672_p6, %p669_p5 }
 0x206   :  { %677 = shalt.err (!%p674_p7)
}
 0x207   :  { %s707_s0 = smov 64   ;;  %s708_s2 = smov 4   ;;  %v632_v14 = vpop.f32.mrb[4].mxu1 }
 0x208   :  { %529 = dma.vmem_to_hbm [thread:$0]  %s524_s16, 256, %s904_s4, [#allocation3], %s707_s0, %s707_s0, %s708_s2   ;;  %v422_v15 = vpop.f32.mrb[5].mxu1 }
 0x209   :  { %s709_s3 = smov [#allocation4]   ;;  %442 = vst.msk [vmem:[%s905_s5 + $0x58] sm:$0xff] %vm109_vm1, %v632_v14  ;;  %441 = vst.msk [vmem:[%s905_s5 + $0x50] sm:$0xff] %vm109_vm1, %v422_v15  ;;  %v513_v16 = vpop.f32.mrb[6].mxu1 }
 0x20a   :  { %s538_s30 = sshll.u32 %s709_s3, 4  ;;  %517 = vst.msk [vmem:[#allocation4] sm:$0xff] %vm109_vm1, %v513_v16  ;;  %v637_v17 = vpop.f32.mrb[7].mxu1  ;;  %s539_s30 = int_to_ptr.vmem [resolvable:$true] %s538_s30 }
 0x20b   :  { %s678_s4 = scalar_lea.vmem %s539_s30, 128  ;;  %p683_p9 = scmp.lt.s32.totalorder %s539_s30, %s539_s30 }
 0x20c   :  { %p679_p8 = scmp.ne.s32.totalorder %s539_s30, %s678_s4  ;;  %p684_p10 = scmp.lt.s32.totalorder %s678_s4, %s678_s4 }
 0x20e   :  { %p685_p11 = por %p684_p10, %p683_p9 }
 0x210   :  { %p686_p12 = pnand %p685_p11, %p679_p8 }
 0x212   :  { %689 = shalt.err (!%p686_p12)
}
 0x213   :  { %s690_s13 = scalar_lea.hbm %s906_s6, 128 }
 0x214   :  { %p691_p13 = scmp.ne.s32.totalorder %s906_s6, %s690_s13  ;;  %p694_p0 = scmp.lt.u32.totalorder %s690_s13, %s906_s6 }
 0x216   :  { %p696_p1 = pnand %p694_p0, %p691_p13 }
 0x218   :  { %699 = shalt.err (!%p696_p1)
}
 0x219   :  { %541 = dma.vmem_to_hbm [thread:$0]  %s539_s30, 128, %s906_s6, [#allocation5]  }
 0x21a   :  { %700 = dma.done.wait [#allocation3], 256  }
 0x21b   :  { %701 = vsyncadd [#allocation3], 4294967040 }
 0x21c   :  { %702 = dma.done.wait [#allocation5], 128  }
 0x21d   :  { %703 = vsyncadd [#allocation5], 4294967168 }
 0x21e   :  { %550 = vsyncpa [#allocation3], 1 }
 0x21f   :  { %551 = vsyncpa [#allocation5], 1 }

</bundles_post_ra>
